<compile_context>
chip_gen: v7x
topology: tpu7x:2x2x1
jax: 0.10.0
libtpu: 0.0.40
codegen_flags: <defaults>
</compile_context>

<pallas_src>
import functools
from typing import NamedTuple

import jax
import jax.numpy as jnp
from jax.experimental import pallas as pl
from jax.experimental.pallas import tpu as pltpu


_H_TILE = 256  # hidden-dim tile for the K-tiled fallback path


def _round_up(x: int, m: int) -> int:
    return ((x + m - 1) // m) * m


def _pad_dim(d: int) -> int:
    # Small dims: keep full-extent blocks (legal when the block dim equals the array dim)
    # instead of padding to 128. Large dims: lane-align to a multiple of 128.
    return d if d <= 128 else _round_up(d, 128)


def _pad2d(a, rows: int, cols: int):
    r, c = a.shape
    if r == rows and c == cols:
        return a
    return jnp.pad(a, ((0, rows - r), (0, cols - c)))


class MLPMeta(NamedTuple):
    in_features: int
    hidden: int
    out_features: int
    i_pad: int
    h_pad: int
    o_pad: int
    tiled: bool


class MLPParams(NamedTuple):
    w1_t: jax.Array  # [i_pad, h_pad] matmul dtype (bf16 by default)
    b1: jax.Array    # [1, h_pad]     f32
    w2_t: jax.Array  # [h_pad, o_pad] matmul dtype
    b2: jax.Array    # [1, o_pad]     f32


# ---------------------------------------------------------------------------
# Kernels
# ---------------------------------------------------------------------------

def _mlp_resident_kernel(x_ref, w1_ref, b1_ref, w2_ref, b2_ref, o_ref):
    """Both weight matrices resident in VMEM; one batch tile per grid step."""
    h = jnp.dot(x_ref[...], w1_ref[...], preferred_element_type=jnp.float32)
    h = jnp.maximum(h + b1_ref[...], 0.0)                       # bias + ReLU in f32 (VPU)
    out = jnp.dot(h.astype(w2_ref.dtype), w2_ref[...],
                  preferred_element_type=jnp.float32)
    o_ref[...] = (out + b2_ref[...]).astype(o_ref.dtype)


def _mlp_htiled_kernel(x_ref, w1_ref, b1_ref, w2_ref, b2_ref, o_ref, acc_ref):
    """Hidden-dim tiled fallback: accumulate relu(x@W1_k+b1_k) @ W2_k over k."""
    k = pl.program_id(1)

    @pl.when(k == 0)
    def _():
        acc_ref[...] = jnp.zeros_like(acc_ref)

    h = jnp.dot(x_ref[...], w1_ref[...], preferred_element_type=jnp.float32)
    h = jnp.maximum(h + b1_ref[...], 0.0)
    acc_ref[...] += jnp.dot(h.astype(w2_ref.dtype), w2_ref[...],
                            preferred_element_type=jnp.float32)

    @pl.when(k == pl.num_programs(1) - 1)
    def _():
        o_ref[...] = (acc_ref[...] + b2_ref[...]).astype(o_ref.dtype)


# ---------------------------------------------------------------------------
# One-time parameter preparation (hoisted out of the per-call forward)
# ---------------------------------------------------------------------------

def prepare_params(w1, b1, w2, b2, *,
                   use_bf16: bool = True,
                   max_resident_weight_bytes: int = 16 * 1024 * 1024):
    """Pre-transpose, pad and (optionally) bf16-cast the PyTorch-layout weights.

    w1: [H, I], b1: [H], w2: [O, H], b2: [O]  (torch nn.Linear layout)
    """
    H, I = w1.shape
    O, H2 = w2.shape
    assert H2 == H, "fc2 input dim must match fc1 output dim"

    mm_dtype = jnp.bfloat16 if use_bf16 else jnp.float32
    dt_size = 2 if use_bf16 else 4

    i_pad = _pad_dim(I)
    o_pad = _pad_dim(O)
    h_resident = _pad_dim(H)

    weight_bytes = (i_pad * h_resident + h_resident * o_pad) * dt_size
    tiled = weight_bytes > max_resident_weight_bytes
    h_pad = _round_up(H, _H_TILE) if tiled else h_resident

    meta = MLPMeta(I, H, O, i_pad, h_pad, o_pad, tiled)
    params = MLPParams(
        w1_t=_pad2d(w1.T.astype(mm_dtype), i_pad, h_pad),
        b1=_pad2d(b1.astype(jnp.float32).reshape(1, -1), 1, h_pad),
        w2_t=_pad2d(w2.T.astype(mm_dtype), h_pad, o_pad),
        b2=_pad2d(b2.astype(jnp.float32).reshape(1, -1), 1, o_pad),
    )
    return params, meta


def _vmem_limit_bytes(meta: MLPMeta, tb: int, dt_size: int) -> int:
    f32 = 4
    if not meta.tiled:
        w = (meta.i_pad * meta.h_pad + meta.h_pad * meta.o_pad) * dt_size
        b = (meta.h_pad + meta.o_pad) * f32
        x = tb * meta.i_pad * dt_size
        o = tb * meta.o_pad * f32
        h = tb * meta.h_pad * f32                      # intermediate activation
        need = 2 * (w + b + x + o) + h                 # 2x: pipeline double buffers
    else:
        th = _H_TILE
        w = (meta.i_pad * th + th * meta.o_pad) * dt_size
        b = (th + meta.o_pad) * f32
        x = tb * meta.i_pad * dt_size
        o = tb * meta.o_pad * f32
        acc = tb * meta.o_pad * f32
        h = tb * th * f32
        need = 2 * (w + b + x + o) + acc + h
    need += 4 * 1024 * 1024                            # compiler-internal headroom
    return int(min(64 * 1024 * 1024, max(32 * 1024 * 1024, need)))


# ---------------------------------------------------------------------------
# Forward
# ---------------------------------------------------------------------------

@functools.partial(jax.jit, static_argnames=("meta", "tb"))
def neural_net_forward(x, params: MLPParams, *, meta: MLPMeta, tb: int = 256):
    """Fused MLP forward: relu(x @ w1.T + b1) @ w2.T + b2 (returns f32 [B, O])."""
    B = x.shape[0]
    mm_dtype = params.w1_t.dtype
    dt_size = params.w1_t.dtype.itemsize

    # Batch tiling: keep one full-extent tile for small B, otherwise pick TB so the last
    # tile has minimal padding and B > tb always yields >= 2 (parallel) tiles.
    if B <= tb:
        TB, B_p = B, B
    else:
        n = -(-B // tb)
        TB = _round_up(-(-B // n), 8)
        B_p = _round_up(B, TB)

    x_p = _pad2d(x.astype(mm_dtype), B_p, meta.i_pad)

    if not meta.tiled:
        grid = (B_p // TB,)
        in_specs = [
            pl.BlockSpec((TB, meta.i_pad), lambda i: (i, 0)),           # x tile (pipelined)
            pl.BlockSpec((meta.i_pad, meta.h_pad), lambda i: (0, 0)),   # W1 resident
            pl.BlockSpec((1, meta.h_pad), lambda i: (0, 0)),            # b1 resident
            pl.BlockSpec((meta.h_pad, meta.o_pad), lambda i: (0, 0)),   # W2 resident
            pl.BlockSpec((1, meta.o_pad), lambda i: (0, 0)),            # b2 resident
        ]
        out_specs = pl.BlockSpec((TB, meta.o_pad), lambda i: (i, 0))
        scratch_shapes = []
        kernel = _mlp_resident_kernel
        dim_sem = ("parallel",)
    else:
        n_h = meta.h_pad // _H_TILE
        grid = (B_p // TB, n_h)
        in_specs = [
            pl.BlockSpec((TB, meta.i_pad), lambda i, k: (i, 0)),
            pl.BlockSpec((meta.i_pad, _H_TILE), lambda i, k: (0, k)),
            pl.BlockSpec((1, _H_TILE), lambda i, k: (0, k)),
            pl.BlockSpec((_H_TILE, meta.o_pad), lambda i, k: (k, 0)),
            pl.BlockSpec((1, meta.o_pad), lambda i, k: (0, 0)),
        ]
        out_specs = pl.BlockSpec((TB, meta.o_pad), lambda i, k: (i, 0))
        scratch_shapes = [pltpu.VMEM((TB, meta.o_pad), jnp.float32)]
        kernel = _mlp_htiled_kernel
        dim_sem = ("parallel", "arbitrary")

    out_p = pl.pallas_call(
        kernel,
        out_shape=jax.ShapeDtypeStruct((B_p, meta.o_pad), jnp.float32),
        grid_spec=pltpu.PrefetchScalarGridSpec(
            num_scalar_prefetch=0,
            grid=grid,
            in_specs=in_specs,
            out_specs=out_specs,
            scratch_shapes=scratch_shapes,
        ),
        compiler_params=pltpu.CompilerParams(
            dimension_semantics=dim_sem,
            vmem_limit_bytes=_vmem_limit_bytes(meta, TB, dt_size),
        ),
    )(x_p, params.w1_t, params.b1, params.w2_t, params.b2)

    out = out_p
    if B_p != B:
        out = out[:B]
    if meta.o_pad != meta.out_features:
        out = out[:, :meta.out_features]
    return out


# ---------------------------------------------------------------------------
# Init (mimics nn.Linear's U(-1/sqrt(fan_in), 1/sqrt(fan_in)))
# ---------------------------------------------------------------------------

def init_params(key, input_size, hidden_size, output_size):
    k1, k2, k3, k4 = jax.random.split(key, 4)
    bound1 = 1.0 / jnp.sqrt(input_size)
    bound2 = 1.0 / jnp.sqrt(hidden_size)
    w1 = jax.random.uniform(k1, (hidden_size, input_size), jnp.float32, -bound1, bound1)
    b1 = jax.random.uniform(k2, (hidden_size,), jnp.float32, -bound1, bound1)
    w2 = jax.random.uniform(k3, (output_size, hidden_size), jnp.float32, -bound2, bound2)
    b2 = jax.random.uniform(k4, (output_size,), jnp.float32, -bound2, bound2)
    return w1, b1, w2, b2


if __name__ == "__main__":
    # --- Test 1: demo-sized DQN net (resident-weight path, no feature padding) ---
    key = jax.random.PRNGKey(0)
    batch, input_size, hidden_size, output_size = 8, 16, 32, 8
    kx, kp = jax.random.split(key)
    x = jax.random.normal(kx, (batch, input_size), jnp.float32)
    w1, b1, w2, b2 = init_params(kp, input_size, hidden_size, output_size)

    params, meta = prepare_params(w1, b1, w2, b2)           # one-time weight prep
    out = jax.block_until_ready(neural_net_forward(x, params, meta=meta))

    ref = jnp.maximum(x @ w1.T + b1, 0.0) @ w2.T + b2
    assert out.shape == (batch, output_size)
    assert jnp.allclose(out, ref, atol=3e-2, rtol=3e-2), float(jnp.max(jnp.abs(out - ref)))

    # --- Test 2: exercise batch tiling + the hidden-tiled accumulator fallback ---
    batch2, hidden2 = 300, 512
    kx2, kp2 = jax.random.split(jax.random.PRNGKey(1))
    x2 = jax.random.normal(kx2, (batch2, input_size), jnp.float32)
    w1b, b1b, w2b, b2b = init_params(kp2, input_size, hidden2, output_size)
    params2, meta2 = prepare_params(w1b, b1b, w2b, b2b, max_resident_weight_bytes=0)
    assert meta2.tiled
    out2 = jax.block_until_ready(neural_net_forward(x2, params2, meta=meta2, tb=128))

    ref2 = jnp.maximum(x2 @ w1b.T + b1b, 0.0) @ w2b.T + b2b
    assert out2.shape == (batch2, output_size)
    assert jnp.allclose(out2, ref2, atol=5e-2, rtol=5e-2), float(jnp.max(jnp.abs(out2 - ref2)))

    print("KERNEL_OK")
</pallas_src>

<mosaic_0001>
module attributes {stable_mosaic.version = 11 : i64} {
  func.func @_mlp_resident_kernel(%arg0: i32, %arg1: memref<8x16xbf16, #tpu.memory_space<vmem>>, %arg2: memref<16x32xbf16, #tpu.memory_space<vmem>>, %arg3: memref<1x32xf32, #tpu.memory_space<vmem>>, %arg4: memref<32x8xbf16, #tpu.memory_space<vmem>>, %arg5: memref<1x8xf32, #tpu.memory_space<vmem>>, %arg6: memref<8x8xf32, #tpu.memory_space<vmem>>) attributes {dimension_semantics = [#tpu.dimension_semantics<parallel>], iteration_bounds = array<i64: 1>, scalar_prefetch = 0 : i64, scratch_operands = 0 : i64, tpu.core_type = #tpu.core_type<tc>, window_params = [{transform_indices = @transform_0, window_bounds = array<i64: 8, 16>}, {pipeline_mode = #tpu.pipeline_mode<synchronous>, transform_indices = @transform_1, window_bounds = array<i64: 16, 32>}, {pipeline_mode = #tpu.pipeline_mode<synchronous>, transform_indices = @transform_2, window_bounds = array<i64: 1, 32>}, {pipeline_mode = #tpu.pipeline_mode<synchronous>, transform_indices = @transform_3, window_bounds = array<i64: 32, 8>}, {pipeline_mode = #tpu.pipeline_mode<synchronous>, transform_indices = @transform_4, window_bounds = array<i64: 1, 8>}, {transform_indices = @transform_5, window_bounds = array<i64: 8, 8>}]} {
    %c0 = arith.constant 0 : index
    %c0_0 = arith.constant 0 : index
    %0 = vector.load %arg1[%c0, %c0_0] : memref<8x16xbf16, #tpu.memory_space<vmem>>, vector<8x16xbf16>
    %c0_1 = arith.constant 0 : index
    %c0_2 = arith.constant 0 : index
    %1 = vector.load %arg2[%c0_1, %c0_2] : memref<16x32xbf16, #tpu.memory_space<vmem>>, vector<16x32xbf16>
    %cst = arith.constant dense<0.000000e+00> : vector<8x32xf32>
    %2 = tpu.matmul %0, %1, %cst {dimension_numbers = #tpu.dot_dimension_numbers<[1], [0], [0], [1], [0, 0, 1, 1], [], []>} : vector<8x16xbf16>, vector<16x32xbf16>, vector<8x32xf32> -> vector<8x32xf32>
    %c0_3 = arith.constant 0 : index
    %c0_4 = arith.constant 0 : index
    %3 = vector.load %arg3[%c0_3, %c0_4] : memref<1x32xf32, #tpu.memory_space<vmem>>, vector<1x32xf32>
    %4 = vector.broadcast %3 : vector<1x32xf32> to vector<8x32xf32>
    %5 = arith.addf %2, %4 : vector<8x32xf32>
    %cst_5 = arith.constant 0.000000e+00 : f32
    %6 = vector.broadcast %cst_5 : f32 to vector<8x32xf32>
    %7 = arith.maximumf %5, %6 : vector<8x32xf32>
    %8 = arith.truncf %7 : vector<8x32xf32> to vector<8x32xbf16>
    %c0_6 = arith.constant 0 : index
    %c0_7 = arith.constant 0 : index
    %9 = vector.load %arg4[%c0_6, %c0_7] : memref<32x8xbf16, #tpu.memory_space<vmem>>, vector<32x8xbf16>
    %cst_8 = arith.constant dense<0.000000e+00> : vector<8x8xf32>
    %10 = tpu.matmul %8, %9, %cst_8 {dimension_numbers = #tpu.dot_dimension_numbers<[1], [0], [0], [1], [0, 0, 1, 1], [], []>} : vector<8x32xbf16>, vector<32x8xbf16>, vector<8x8xf32> -> vector<8x8xf32>
    %c0_9 = arith.constant 0 : index
    %c0_10 = arith.constant 0 : index
    %11 = vector.load %arg5[%c0_9, %c0_10] : memref<1x8xf32, #tpu.memory_space<vmem>>, vector<1x8xf32>
    %12 = vector.broadcast %11 : vector<1x8xf32> to vector<8x8xf32>
    %13 = arith.addf %10, %12 : vector<8x8xf32>
    %c0_11 = arith.constant 0 : index
    %c0_12 = arith.constant 0 : index
    %14 = vector.load %arg6[%c0_11, %c0_12] : memref<8x8xf32, #tpu.memory_space<vmem>>, vector<8x8xf32>
    tpu.vector_store %arg6[%c0_11, %c0_12], %13 {strides = array<i32>} : memref<8x8xf32, #tpu.memory_space<vmem>>, vector<8x8xf32>,
    return
  }
  func.func @transform_0(%arg0: i32) -> (i32, i32) {
    %c0_i32 = arith.constant 0 : i32
    %c0_i32_0 = arith.constant 0 : i32
    return %arg0, %c0_i32 : i32, i32
  }
  func.func @transform_1(%arg0: i32) -> (i32, i32) {
    %c0_i32 = arith.constant 0 : i32
    %c0_i32_0 = arith.constant 0 : i32
    %c0_i32_1 = arith.constant 0 : i32
    return %c0_i32, %c0_i32_0 : i32, i32
  }
  func.func @transform_2(%arg0: i32) -> (i32, i32) {
    %c0_i32 = arith.constant 0 : i32
    %c0_i32_0 = arith.constant 0 : i32
    %c0_i32_1 = arith.constant 0 : i32
    return %c0_i32, %c0_i32_0 : i32, i32
  }
  func.func @transform_3(%arg0: i32) -> (i32, i32) {
    %c0_i32 = arith.constant 0 : i32
    %c0_i32_0 = arith.constant 0 : i32
    %c0_i32_1 = arith.constant 0 : i32
    return %c0_i32, %c0_i32_0 : i32, i32
  }
  func.func @transform_4(%arg0: i32) -> (i32, i32) {
    %c0_i32 = arith.constant 0 : i32
    %c0_i32_0 = arith.constant 0 : i32
    %c0_i32_1 = arith.constant 0 : i32
    return %c0_i32, %c0_i32_0 : i32, i32
  }
  func.func @transform_5(%arg0: i32) -> (i32, i32) {
    %c0_i32 = arith.constant 0 : i32
    %c0_i32_0 = arith.constant 0 : i32
    return %arg0, %c0_i32 : i32, i32
  }
}

</mosaic_0001>

<bundles_post_ra>
// kernel: neural_net_forward.1
= control target key start
LH: loop header
LB: loop body
LE: loop exit
PB: predicated region body
PF: predicated region fallthrough
CT: control target
= control target key end

     0   :  { %v223_v1 = vmov 0.0   ;;  %vm38_vm0 = vcmask 130048   ;;  %vm224_vm1 = vmmov 0   ;;  %s286_s0 = inlined_call_operand.vmem [shape: bf16[8,16], index: 0, kind: input, shape index: {}]   ;;  %s287_s1 = inlined_call_operand.vmem [shape: bf16[16,32], index: 1, kind: input, shape index: {}]   ;;  %s288_s2 = inlined_call_operand.vmem [shape: f32[1,32], index: 2, kind: input, shape index: {}]   ;;  %s289_s3 = inlined_call_operand.vmem [shape: bf16[32,8], index: 3, kind: input, shape index: {}]   ;;  %s290_s4 = inlined_call_operand.vmem [shape: f32[1,8], index: 4, kind: input, shape index: {}]   ;;  %s291_s5 = inlined_call_operand.hbm [shape: f32[8,8], index: 5, kind: output, shape index: {}]  }
   0x1   :  { %v196_v0 = vld [vmem:[%s287_s1] sm:$0xff]   ;;  %179 = vmatprep.subr.bf16.mxu0 %v223_v1  ;;  %185 = vmatprep.subr.bf16.mxu1 %v223_v1 }
   0x2   :  { %v22_v2 = vld [vmem:[%s286_s0] sm:$0xf]  ;;  %180 = vmatpush3.bf16.msra.mxu0 %v196_v0  ;;  %181 = vmatprep.mubr.msk.bf16.mxu0 %vm224_vm1, %v223_v1 }
   0x3   :  { %189 = vmatprep.mubr.msk.bf16.mxu1 %vm224_vm1, %v223_v1 }
   0x4   :  { %10 = vsyncpa [#allocation3], 0  ;;  %v197_v3 = vld [vmem:[%s289_s3] sm:$0xff]   ;;  %v198_v4 = vld [vmem:[%s289_s3 + $0x8] sm:$0xff]   ;;  %vm107_vm2 = vcmask 261120   ;;  %s225_s28 = smov [#allocation2]  }
   0x5   :  { %182 = vmatmul.mubr.msk.bf16.vlgmr.msra.gmra.mrb[0].mxu0 %vm38_vm0, %v22_v2  ;;  %186 = vmatpush3.bf16.msra.mxu1 %v197_v3  ;;  %v167_v5 = vld [vmem:[%s288_s2] ss:$0 sm:$0xff]  ;;  %s159_s3 = sshll.u32 %s225_s28, 4  ;;  %vm151_vm3 = vcmask 64512   ;;  %s160_s3 = int_to_ptr.vmem [resolvable:$true] %s159_s3 }
   0x6   :  { %187 = vmatprep.subr.bf16.mxu1 %v223_v1  ;;  %v170_v13 = vld [vmem:[%s290_s4] ss:$0 sm:$0xff]  ;;  %s199_s2 = scalar_lea.vmem %s160_s3, 128  ;;  %p204_p1 = scmp.lt.s32.totalorder %s160_s3, %s160_s3 }
   0x7   :  { %p200_p0 = scmp.ne.s32.totalorder %s160_s3, %s199_s2  ;;  %p205_p2 = scmp.lt.s32.totalorder %s199_s2, %s199_s2 }
   0x9   :  { %188 = vmatpush3.bf16.msra.mxu1 %v198_v4  ;;  %p206_p3 = por %p205_p2, %p204_p1 }
   0xb   :  { %p207_p4 = pnand %p206_p3, %p200_p0 }
  0xd8   :  { %v76_v6 = vpop.f32.mrb[0].mxu0 }
  0xd9   :  { %v77_v7 = vadd.f32 %v167_v5, %v76_v6  ;;  %v183_v8 = vpop.f32.mrb[1].mxu0 }
  0xda   :  { %v79_v9 = vpop.f32.mrb[2].mxu0 }
  0xdb   :  { %v82_v10 = vmax.f32 %v77_v7, 0.0  ;;  %v184_v11 = vpop.f32.mrb[3].mxu0 }
  0xdd   :  { %v83_v12 = vpack.c.bf16 %v82_v10, %v82_v10 }
  0xdf   :  { %190 = vmatmul.mubr.msk.bf16.vlgmr.msra.gmra.mrb[0].mxu1 %vm107_vm2, %v83_v12 }
 0x1b2   :  { %v145_v14 = vpop.f32.mrb[0].mxu1 }
 0x1b3   :  { %v146_v15 = vadd.f32 %v170_v13, %v145_v14  ;;  %v191_v16 = vpop.f32.mrb[1].mxu1 }
 0x1b4   :  { %v148_v17 = vpop.f32.mrb[2].mxu1 }
 0x1b5   :  { %v192_v18 = vpop.f32.mrb[3].mxu1  ;;  %152 = vst.msk [vmem:[#allocation2] sm:$0xff] %vm151_vm3, %v146_v15 }
 0x1b6   :  { %210 = shalt.err (!%p207_p4)
}
 0x1b7   :  { %s211_s4 = scalar_lea.hbm %s291_s5, 128 }
 0x1b8   :  { %p212_p5 = scmp.ne.s32.totalorder %s291_s5, %s211_s4  ;;  %p215_p6 = scmp.lt.u32.totalorder %s211_s4, %s291_s5 }
 0x1ba   :  { %p217_p7 = pnand %p215_p6, %p212_p5 }
 0x1bc   :  { %220 = shalt.err (!%p217_p7)
}
 0x1bd   :  { %162 = dma.vmem_to_hbm [thread:$0]  %s160_s3, 128, %s291_s5, [#allocation3]  }
 0x1be   :  { %221 = dma.done.wait [#allocation3], 128  }
 0x1bf   :  { %222 = vsyncadd [#allocation3], 4294967168 }
 0x1c0   :  { %166 = vsyncpa [#allocation3], 1 }

</bundles_post_ra>
